<compile_context>
chip_gen: v7x
topology: tpu7x:2x2x1
jax: 0.10.0
libtpu: 0.0.40
codegen_flags: <defaults>
</compile_context>

<pallas_src>
import functools

import jax
import jax.numpy as jnp
from jax.experimental import pallas as pl
from jax.experimental.pallas import tpu as pltpu


def _bottleneck_kernel(x_ref, w_ref, b_ref, eps_ref, z_ref):
    dp = z_ref.shape[-1]                              # lane-padded Dout (multiple of 128)

    # Single fused MXU matmul for both projections: (TB, Din) @ (Din, 2*Dp),
    # bf16 inputs, f32 accumulation.
    acc = jnp.dot(x_ref[...], w_ref[...], preferred_element_type=jnp.float32)
    acc = acc + b_ref[...]                            # fused f32 bias, one broadcast per tile

    mu = acc[:, :dp]                                  # static, lane-tile-aligned slices
    logvar = acc[:, dp:]

    # Epilogue stays in f32 (v5e has no bf16 VPU/EUP); cast only at the final store.
    std = jnp.exp(logvar * 0.5)                       # the only transcendental left
    z_ref[...] = (mu + std * eps_ref[...]).astype(z_ref.dtype)


def pack_bottleneck_params(w_mu, b_mu, w_lv, b_lv, *, mxu_dtype=jnp.bfloat16):
    """One-time parameter prep (hoisted out of the forward pass).

    w_*: (Din, Dout)   b_*: (Dout,) or (1, Dout)
    Returns (w_packed bf16 (Din, 2*Dp), b_packed f32 (1, 2*Dp), Dout, Dp) with
    Dp = Dout rounded up to a multiple of 128.  Padded columns have zero
    weight/bias -> mu_pad = 0, logvar_pad = 0 (std = 1); the wrapper slices
    those columns off the output.
    """
    din, dout = w_mu.shape
    dp = max(128, ((dout + 127) // 128) * 128)

    w_cat = jnp.zeros((din, 2 * dp), jnp.float32)
    w_cat = w_cat.at[:, :dout].set(w_mu.astype(jnp.float32))
    w_cat = w_cat.at[:, dp:dp + dout].set(w_lv.astype(jnp.float32))
    b_cat = jnp.zeros((1, 2 * dp), jnp.float32)
    b_cat = b_cat.at[:, :dout].set(b_mu.reshape(1, -1).astype(jnp.float32))
    b_cat = b_cat.at[:, dp:dp + dout].set(b_lv.reshape(1, -1).astype(jnp.float32))

    return w_cat.astype(mxu_dtype), b_cat, dout, dp


@functools.partial(jax.jit, static_argnames=("dout", "block_batch"))
def bottleneck_forward(x, w_packed, b_packed, eps, *, dout, block_batch=512):
    """x: (B, Din); w_packed: (Din, 2*Dp) bf16; b_packed: (1, 2*Dp) f32;
    eps: (B, Dp) f32 standard-normal noise.  Returns z: (B, dout) = mu + std*eps.
    """
    B, Din = x.shape
    Dp = b_packed.shape[-1] // 2

    tb = min(block_batch, B)
    assert B % tb == 0 and tb % 8 == 0, "batch must tile into multiples of 8"
    grid = (B // tb,)

    x_in = x.astype(w_packed.dtype)                   # bf16 MXU input, halves HBM read

    z_pad = pl.pallas_call(
        _bottleneck_kernel,
        out_shape=jax.ShapeDtypeStruct((B, Dp), x.dtype),
        grid=grid,
        in_specs=[
            # x / eps tiles march over batch.
            pl.BlockSpec((tb, Din), lambda i: (i, 0)),
            # Fused weights/bias: constant index_map -> VMEM-resident, one HBM
            # read total.  (For very large Din on v7x: pipeline_mode=pl.Buffered(1)
            # or a K-split grid axis would halve their VMEM footprint.)
            pl.BlockSpec((Din, 2 * Dp), lambda i: (0, 0)),
            pl.BlockSpec((1, 2 * Dp), lambda i: (0, 0)),
            pl.BlockSpec((tb, Dp), lambda i: (i, 0)),
        ],
        # Lane-dense output tile (last dim = Dp, multiple of 128 -> unmasked vst).
        out_specs=pl.BlockSpec((tb, Dp), lambda i: (i, 0)),
        compiler_params=pltpu.CompilerParams(
            dimension_semantics=("parallel",),        # megacore / v7x dual-TC sharding
            vmem_limit_bytes=32 * 1024 * 1024,
        ),
    )(x_in, w_packed, b_packed, eps)

    return z_pad[:, :dout]


if __name__ == "__main__":
    key = jax.random.PRNGKey(0)
    k_x, k_wmu, k_bmu, k_wlv, k_blv, k_eps = jax.random.split(key, 6)

    batch, in_features, out_features = 256, 32, 16

    # Deterministic synthetic parameters (torch.nn.Linear-like uniform init).
    bound = 1.0 / (in_features ** 0.5)
    x = jax.random.normal(k_x, (batch, in_features), dtype=jnp.float32)
    w_mu = jax.random.uniform(k_wmu, (in_features, out_features), jnp.float32, -bound, bound)
    b_mu = jax.random.uniform(k_bmu, (1, out_features), jnp.float32, -bound, bound)
    w_lv = jax.random.uniform(k_wlv, (in_features, out_features), jnp.float32, -bound, bound)
    b_lv = jax.random.uniform(k_blv, (1, out_features), jnp.float32, -bound, bound)

    # One-time parameter packing (hoisted out of the per-call path).
    w_packed, b_packed, dout, dp = pack_bottleneck_params(w_mu, b_mu, w_lv, b_lv)

    # Reparameterization noise eps ~ N(0,1), generated once per forward call
    # (lane-padded to Dp so the in-kernel tile is lane-dense).
    eps = jax.random.normal(k_eps, (batch, dp), dtype=jnp.float32)

    z = bottleneck_forward(x, w_packed, b_packed, eps, dout=dout)
    jax.block_until_ready(z)

    # Pure-JAX reference at the same precision the kernel uses (bf16 in, f32 acc).
    xb = x.astype(jnp.bfloat16).astype(jnp.float32)
    wmb = w_mu.astype(jnp.bfloat16).astype(jnp.float32)
    wlb = w_lv.astype(jnp.bfloat16).astype(jnp.float32)
    mu_ref = xb @ wmb + b_mu
    std_ref = jnp.exp((xb @ wlb + b_lv) * 0.5)
    z_ref = mu_ref + std_ref * eps[:, :dout]

    assert z.shape == (batch, out_features), "output shape mismatch"
    assert bool(jnp.all(jnp.isfinite(z))), "non-finite output"
    assert jnp.allclose(z, z_ref, atol=2e-3, rtol=2e-3), "reparameterized output mismatch"

    # TODO(synk): the reparameterize=False branch (mu projection + MCDropout) is not
    # exercised here; it would reuse this kernel minus the logvar half, with a
    # Bernoulli dropout mask supplied (or drawn in-kernel on real TPU hardware).
    print("KERNEL_OK")
</pallas_src>

<mosaic_0001>
module attributes {stable_mosaic.version = 11 : i64} {
  func.func @_bottleneck_kernel(%arg0: i32, %arg1: memref<256x32xbf16, #tpu.memory_space<vmem>>, %arg2: memref<32x256xbf16, #tpu.memory_space<vmem>>, %arg3: memref<1x256xf32, #tpu.memory_space<vmem>>, %arg4: memref<256x128xf32, #tpu.memory_space<vmem>>, %arg5: memref<256x128xf32, #tpu.memory_space<vmem>>) attributes {dimension_semantics = [#tpu.dimension_semantics<parallel>], iteration_bounds = array<i64: 1>, scalar_prefetch = 0 : i64, scratch_operands = 0 : i64, tpu.core_type = #tpu.core_type<tc>, window_params = [{transform_indices = @transform_0, window_bounds = array<i64: 256, 32>}, {pipeline_mode = #tpu.pipeline_mode<synchronous>, transform_indices = @transform_1, window_bounds = array<i64: 32, 256>}, {pipeline_mode = #tpu.pipeline_mode<synchronous>, transform_indices = @transform_2, window_bounds = array<i64: 1, 256>}, {transform_indices = @transform_3, window_bounds = array<i64: 256, 128>}, {transform_indices = @transform_4, window_bounds = array<i64: 256, 128>}]} {
    %c0 = arith.constant 0 : index
    %c0_0 = arith.constant 0 : index
    %0 = vector.load %arg1[%c0, %c0_0] : memref<256x32xbf16, #tpu.memory_space<vmem>>, vector<256x32xbf16>
    %c0_1 = arith.constant 0 : index
    %c0_2 = arith.constant 0 : index
    %1 = vector.load %arg2[%c0_1, %c0_2] : memref<32x256xbf16, #tpu.memory_space<vmem>>, vector<32x256xbf16>
    %cst = arith.constant dense<0.000000e+00> : vector<256x256xf32>
    %2 = tpu.matmul %0, %1, %cst {dimension_numbers = #tpu.dot_dimension_numbers<[1], [0], [0], [1], [0, 0, 1, 1], [], []>} : vector<256x32xbf16>, vector<32x256xbf16>, vector<256x256xf32> -> vector<256x256xf32>
    %c0_3 = arith.constant 0 : index
    %c0_4 = arith.constant 0 : index
    %3 = vector.load %arg3[%c0_3, %c0_4] : memref<1x256xf32, #tpu.memory_space<vmem>>, vector<1x256xf32>
    %4 = vector.broadcast %3 : vector<1x256xf32> to vector<256x256xf32>
    %5 = arith.addf %2, %4 : vector<256x256xf32>
    %6 = vector.extract_strided_slice %5 {offsets = [0, 0], sizes = [256, 128], strides = [1, 1]} : vector<256x256xf32> to vector<256x128xf32>
    %7 = vector.extract_strided_slice %5 {offsets = [0, 128], sizes = [256, 128], strides = [1, 1]} : vector<256x256xf32> to vector<256x128xf32>
    %cst_5 = arith.constant 5.000000e-01 : f32
    %8 = vector.broadcast %cst_5 : f32 to vector<256x128xf32>
    %9 = arith.mulf %7, %8 : vector<256x128xf32>
    %10 = math.exp %9 : vector<256x128xf32>
    %c0_6 = arith.constant 0 : index
    %c0_7 = arith.constant 0 : index
    %11 = vector.load %arg4[%c0_6, %c0_7] : memref<256x128xf32, #tpu.memory_space<vmem>>, vector<256x128xf32>
    %12 = arith.mulf %10, %11 : vector<256x128xf32>
    %13 = arith.addf %6, %12 : vector<256x128xf32>
    %c0_8 = arith.constant 0 : index
    %c0_9 = arith.constant 0 : index
    %14 = vector.load %arg5[%c0_8, %c0_9] : memref<256x128xf32, #tpu.memory_space<vmem>>, vector<256x128xf32>
    tpu.vector_store %arg5[%c0_8, %c0_9], %13 {strides = array<i32>} : memref<256x128xf32, #tpu.memory_space<vmem>>, vector<256x128xf32>,
    return
  }
  func.func @transform_0(%arg0: i32) -> (i32, i32) {
    %c0_i32 = arith.constant 0 : i32
    %c0_i32_0 = arith.constant 0 : i32
    return %arg0, %c0_i32 : i32, i32
  }
  func.func @transform_1(%arg0: i32) -> (i32, i32) {
    %c0_i32 = arith.constant 0 : i32
    %c0_i32_0 = arith.constant 0 : i32
    %c0_i32_1 = arith.constant 0 : i32
    return %c0_i32, %c0_i32_0 : i32, i32
  }
  func.func @transform_2(%arg0: i32) -> (i32, i32) {
    %c0_i32 = arith.constant 0 : i32
    %c0_i32_0 = arith.constant 0 : i32
    %c0_i32_1 = arith.constant 0 : i32
    return %c0_i32, %c0_i32_0 : i32, i32
  }
  func.func @transform_3(%arg0: i32) -> (i32, i32) {
    %c0_i32 = arith.constant 0 : i32
    %c0_i32_0 = arith.constant 0 : i32
    return %arg0, %c0_i32 : i32, i32
  }
  func.func @transform_4(%arg0: i32) -> (i32, i32) {
    %c0_i32 = arith.constant 0 : i32
    %c0_i32_0 = arith.constant 0 : i32
    return %arg0, %c0_i32 : i32, i32
  }
}

</mosaic_0001>

<bundles_post_ra>
// kernel: bottleneck_forward.1
= control target key start
LH: loop header
LB: loop body
LE: loop exit
PB: predicated region body
PF: predicated region fallthrough
CT: control target
= control target key end

     0   :  { %9 = vsyncpa [#allocation3], 0  ;;  %s805_s15 = smov [#allocation2]   ;;  %s1260_s0 = inlined_call_operand.vmem [shape: bf16[256,32], index: 0, kind: input, shape index: {}]   ;;  %s1261_s1 = inlined_call_operand.hbm [shape: bf16[32,256], index: 1, kind: input, shape index: {}]   ;;  %s1262_s2 = inlined_call_operand.vmem [shape: f32[1,256], index: 2, kind: input, shape index: {}]   ;;  %s1263_s3 = inlined_call_operand.vmem [shape: f32[256,128], index: 3, kind: input, shape index: {}]   ;;  %s1264_s4 = inlined_call_operand.vmem [shape: f32[256,128], index: 4, kind: output, shape index: {}]  }
   0x1   :  { %s17_s16 = sshll.u32 %s805_s15, 4  ;;  %s781_s19 = scalar_lea.hbm %s1261_s1, 512  ;;  %s18_s16 = int_to_ptr.vmem [resolvable:$true] %s17_s16 }
   0x2   :  { %p782_p0 = scmp.ne.s32.totalorder %s1261_s1, %s781_s19  ;;  %p785_p1 = scmp.lt.u32.totalorder %s781_s19, %s1261_s1 }
   0x4   :  { %p787_p2 = pnand %p785_p1, %p782_p0 }
   0x6   :  { %790 = shalt.err (!%p787_p2)
}
   0x7   :  { %s791_s24 = scalar_lea.vmem %s18_s16, 512  ;;  %p796_p4 = scmp.lt.s32.totalorder %s18_s16, %s18_s16 }
   0x8   :  { %p792_p3 = scmp.ne.s32.totalorder %s18_s16, %s791_s24  ;;  %p797_p5 = scmp.lt.s32.totalorder %s791_s24, %s791_s24 }
   0xa   :  { %p798_p6 = por %p797_p5, %p796_p4 }
   0xc   :  { %p799_p7 = pnand %p798_p6, %p792_p3 }
   0xe   :  { %802 = shalt.err (!%p799_p7)
}
   0xf   :  { %s806_s25 = smov 128   ;;  %s807_s26 = smov 8  }
  0x10   :  { %23 = dma.hbm_to_vmem [thread:$0]  %s1261_s1, 512, %s18_s16, [#allocation3], %s806_s25, %s806_s25, %s807_s26  }
  0x11   :  { %803 = dma.done.wait [#allocation3], 512  }
  0x12   :  { %804 = vsyncadd [#allocation3], 4294966784  ;;  %v808_v0 = vmov 0   ;;  %v695_v1 = vld [vmem:[#allocation2 + $0x4] ss:$8 sps:$4 sm:$0xff]   ;;  %vm180_vm0 = vcmask 261120   ;;  %v70_v21 = vlaneseq }
  0x13   :  { %261 = vmatprep.mubr.bf16.mxu0 %v808_v0  ;;  %341 = vmatprep.mubr.bf16.mxu1 %v808_v0  ;;  %v697_v2 = vld [vmem:[#allocation2] ss:$8 sps:$4 sm:$0xff]   ;;  %v698_v3 = vld [vmem:[#allocation2 + $0x14] ss:$8 sps:$4 sm:$0xff]   ;;  %v700_v4 = vld [vmem:[#allocation2 + $0x10] ss:$8 sps:$4 sm:$0xff]  }
  0x14   :  { %229 = vmatprep.subr.bf16.mxu0 %v695_v1  ;;  %687 = vmatprep.subr.bf16.mxu1 %v695_v1  ;;  %v701_v5 = vld [vmem:[%s1260_s0] sm:$0xff]   ;;  %v703_v7 = vld [vmem:[%s1260_s0 + $0x8] sm:$0xff]   ;;  %v705_v9 = vld [vmem:[%s1260_s0 + $0x10] sm:$0xff]   ;;  %v71_v22 = vshrl.u32 %v70_v21, 7 }
  0x15   :  { %230 = vmatpush1.bf16.msra.mxu0 %v697_v2  ;;  %689 = vmatpush1.bf16.msra.mxu1 %v697_v2  ;;  %v702_v6 = vld [vmem:[%s1260_s0 + $0x40] sm:$0xff]   ;;  %v704_v8 = vld [vmem:[%s1260_s0 + $0x48] sm:$0xff]   ;;  %v706_v10 = vld [vmem:[%s1260_s0 + $0x50] sm:$0xff]  }
  0x16   :  { %231 = vmatprep.subr.bf16.mxu0 %v698_v3  ;;  %688 = vmatprep.subr.bf16.mxu1 %v698_v3  ;;  %v707_v11 = vld [vmem:[%s1260_s0 + $0x18] sm:$0xff]   ;;  %v709_v13 = vld [vmem:[%s1260_s0 + $0x20] sm:$0xff]   ;;  %v711_v15 = vld [vmem:[%s1260_s0 + $0x28] sm:$0xff]   ;;  %v76_v23 = vsub.s32 1, %v71_v22  ;;  %v72_v48 = vsub.s32 0, %v71_v22 }
  0x17   :  { %v708_v12 = vld [vmem:[%s1260_s0 + $0x58] sm:$0xff]   ;;  %v710_v14 = vld [vmem:[%s1260_s0 + $0x60] sm:$0xff]   ;;  %v712_v16 = vld [vmem:[%s1260_s0 + $0x68] sm:$0xff]  }
  0x18   :  { %v713_v17 = vld [vmem:[%s1260_s0 + $0x30] sm:$0xff]   ;;  %v715_v19 = vld [vmem:[%s1260_s0 + $0x38] sm:$0xff]   ;;  %v68_v24 = vld [vmem:[%s1262_s2] sm:$0x3] }
  0x19   :  { %232 = vmatpush1.bf16.msra.mxu0 %v700_v4  ;;  %690 = vmatpush1.bf16.msra.mxu1 %v700_v4  ;;  %v714_v18 = vld [vmem:[%s1260_s0 + $0x70] sm:$0xff]   ;;  %v716_v20 = vld [vmem:[%s1260_s0 + $0x78] sm:$0xff]   ;;  %v913_v25 = vrot.slane %v68_v24, %v76_v23  ;;  %v933_v61 = vrot.slane %v68_v24, %v72_v48  ;;  %v518_v2 = vld [vmem:[%s1263_s3] sm:$0xff] }
  0x1a   :  { %v535_v21 = vld [vmem:[%s1263_s3 + $0x88] sm:$0xff] }
  0x1c   :  { %671 = vmatmul.mubr.msk.bf16.vlgmr.msra.gmra.mrb[0].mxu0 %vm180_vm0, %v701_v5  ;;  %679 = vmatmul.mubr.msk.bf16.vlgmr.msra.gmra.mrb[0].mxu1 %vm180_vm0, %v702_v6 }
  0x1d   :  { %271 = vmatprep.mubr.bf16.mxu0 %v808_v0  ;;  %351 = vmatprep.mubr.bf16.mxu1 %v808_v0 }
  0x24   :  { %672 = vmatmul.mubr.msk.bf16.gmra.mrb[4].mxu0 %vm180_vm0, %v703_v7  ;;  %680 = vmatmul.mubr.msk.bf16.gmra.mrb[4].mxu1 %vm180_vm0, %v704_v8  ;;  %v534_v7 = vld [vmem:[%s1263_s3 + $0x80] sm:$0xff] }
  0x25   :  { %281 = vmatprep.mubr.bf16.mxu0 %v808_v0  ;;  %361 = vmatprep.mubr.bf16.mxu1 %v808_v0 }
  0x2c   :  { %673 = vmatmul.mubr.msk.bf16.gmra.mrb[8].mxu0 %vm180_vm0, %v705_v9  ;;  %681 = vmatmul.mubr.msk.bf16.gmra.mrb[8].mxu1 %vm180_vm0, %v706_v10 }
  0x2d   :  { %291 = vmatprep.mubr.bf16.mxu0 %v808_v0  ;;  %371 = vmatprep.mubr.bf16.mxu1 %v808_v0 }
  0x34   :  { %674 = vmatmul.mubr.msk.bf16.gmra.mrb[12].mxu0 %vm180_vm0, %v707_v11  ;;  %682 = vmatmul.mubr.msk.bf16.gmra.mrb[12].mxu1 %vm180_vm0, %v708_v12  ;;  %v519_v12 = vld [vmem:[%s1263_s3 + $0x8] sm:$0xff] }
  0x35   :  { %301 = vmatprep.mubr.bf16.mxu0 %v808_v0  ;;  %381 = vmatprep.mubr.bf16.mxu1 %v808_v0 }
  0x3c   :  { %675 = vmatmul.mubr.msk.bf16.gmra.mrb[16].mxu0 %vm180_vm0, %v709_v13  ;;  %683 = vmatmul.mubr.msk.bf16.gmra.mrb[16].mxu1 %vm180_vm0, %v710_v14 }
  0x3d   :  { %311 = vmatprep.mubr.bf16.mxu0 %v808_v0  ;;  %391 = vmatprep.mubr.bf16.mxu1 %v808_v0 }
  0x44   :  { %676 = vmatmul.mubr.msk.bf16.gmra.mrb[20].mxu0 %vm180_vm0, %v711_v15  ;;  %684 = vmatmul.mubr.msk.bf16.gmra.mrb[20].mxu1 %vm180_vm0, %v712_v16 }
  0x45   :  { %321 = vmatprep.mubr.bf16.mxu0 %v808_v0  ;;  %401 = vmatprep.mubr.bf16.mxu1 %v808_v0 }
  0x4c   :  { %677 = vmatmul.mubr.msk.bf16.gmra.mrb[24].mxu0 %vm180_vm0, %v713_v17  ;;  %685 = vmatmul.mubr.msk.bf16.gmra.mrb[24].mxu1 %vm180_vm0, %v714_v18 }
  0x4d   :  { %331 = vmatprep.mubr.bf16.mxu0 %v808_v0  ;;  %411 = vmatprep.mubr.bf16.mxu1 %v808_v0 }
  0x54   :  { %678 = vmatmul.mubr.msk.bf16.gmra.mrb[28].mxu0 %vm180_vm0, %v715_v19  ;;  %686 = vmatmul.mubr.msk.bf16.gmra.mrb[28].mxu1 %vm180_vm0, %v716_v20 }
  0xef   :  { %v263_v26 = vpop.f32.mrb[0].mxu0  ;;  %v343_v27 = vpop.f32.mrb[0].mxu1 }
  0xf0   :  { %v265_v28 = vpop.f32.mrb[1].mxu0  ;;  %v345_v29 = vpop.f32.mrb[1].mxu1  ;;  %v264_v11 = vadd.f32 %v263_v26, %v933_v61  ;;  %v344_v18 = vadd.f32 %v343_v27, %v933_v61 }
  0xf1   :  { %v266_v30 = vadd.f32 %v265_v28, %v913_v25  ;;  %v346_v31 = vadd.f32 %v345_v29, %v913_v25  ;;  %v267_v32 = vpop.f32.mrb[2].mxu0  ;;  %v917_v33 = vpop.f32.mrb[2].mxu1 }
  0xf2   :  { %v269_v34 = vpop.f32.mrb[3].mxu0  ;;  %v349_v35 = vpop.f32.mrb[3].mxu1  ;;  %v268_v20 = vadd.f32 %v267_v32, %v933_v61  ;;  %v348_v27 = vadd.f32 %v917_v33, %v933_v61  ;;  %v520_v33 = vld [vmem:[%s1263_s3 + $0x10] sm:$0xff] }
  0xf3   :  { %v422_v36 = vmul.f32 0.5, %v266_v30  ;;  %v438_v37 = vmul.f32 0.5, %v346_v31  ;;  %v270_v38 = vadd.f32 %v269_v34, %v913_v25  ;;  %v350_v39 = vadd.f32 %v349_v35, %v913_v25 }
  0xf5   :  { %v454_v40 = vmul.f32 1.442695, %v422_v36  ;;  %v486_v41 = vmul.f32 1.442695, %v438_v37  ;;  %v423_v42 = vmul.f32 0.5, %v270_v38  ;;  %v439_v43 = vmul.f32 0.5, %v350_v39 }
  0xf7   :  { %717 = vpow2.f32 %v454_v40  ;;  %v456_v44 = vmul.f32 1.442695, %v423_v42  ;;  %v488_v45 = vmul.f32 1.442695, %v439_v43  ;;  %v921_v46 = vpop.f32.mrb[4].mxu0  ;;  %v923_v47 = vpop.f32.mrb[4].mxu1 }
  0xf8   :  { %719 = vpow2.f32 %v486_v41  ;;  %v275_v49 = vpop.f32.mrb[5].mxu0  ;;  %v355_v50 = vpop.f32.mrb[5].mxu1 }
  0xf9   :  { %721 = vpow2.f32 %v456_v44  ;;  %v276_v51 = vadd.f32 %v275_v49, %v913_v25  ;;  %v356_v52 = vadd.f32 %v355_v50, %v913_v25  ;;  %v927_v53 = vpop.f32.mrb[6].mxu0  ;;  %v929_v54 = vpop.f32.mrb[6].mxu1  ;;  %v536_v44 = vld [vmem:[%s1263_s3 + $0x90] sm:$0xff] }
  0xfa   :  { %723 = vpow2.f32 %v488_v45  ;;  %v279_v55 = vpop.f32.mrb[7].mxu0  ;;  %v359_v56 = vpop.f32.mrb[7].mxu1 }
  0xfb   :  { %v424_v57 = vmul.f32 0.5, %v276_v51  ;;  %v440_v58 = vmul.f32 0.5, %v356_v52  ;;  %v280_v59 = vadd.f32 %v279_v55, %v913_v25  ;;  %v360_v60 = vadd.f32 %v359_v56, %v913_v25 }
  0xfc   :  { %v274_v56 = vadd.f32 %v921_v46, %v933_v61  ;;  %v278_v46 = vadd.f32 %v927_v53, %v933_v61 }
  0xfd   :  { %v458_v62 = vmul.f32 1.442695, %v424_v57  ;;  %v490_v63 = vmul.f32 1.442695, %v440_v58  ;;  %v425_v0 = vmul.f32 0.5, %v280_v59  ;;  %v441_v1 = vmul.f32 0.5, %v360_v60 }
  0xfe   :  { %v354_v57 = vadd.f32 %v923_v47, %v933_v61  ;;  %v521_v58 = vld [vmem:[%s1263_s3 + $0x18] sm:$0xff]  ;;  %v358_v47 = vadd.f32 %v929_v54, %v933_v61 }
  0xff   :  { %725 = vpow2.f32 %v458_v62  ;;  %v460_v3 = vmul.f32 1.442695, %v425_v0  ;;  %v492_v4 = vmul.f32 1.442695, %v441_v1  ;;  %v938_v5 = vpop.f32.mrb[8].mxu0  ;;  %v940_v6 = vpop.f32.mrb[8].mxu1 }
 0x100   :  { %727 = vpow2.f32 %v490_v63  ;;  %v285_v8 = vpop.f32.mrb[9].mxu0  ;;  %v365_v9 = vpop.f32.mrb[9].mxu1 }
 0x101   :  { %v718_v10 = vpop.eup %717  ;;  %729 = vpow2.f32 %v460_v3  ;;  %v286_v13 = vadd.f32 %v285_v8, %v913_v25  ;;  %v366_v14 = vadd.f32 %v365_v9, %v913_v25  ;;  %v951_v15 = vpop.f32.mrb[10].mxu0 }
 0x102   :  { %v953_v16 = vpop.f32.mrb[10].mxu1  ;;  %v720_v17 = vpop.eup %719  ;;  %v550_v19 = vmul.f32 %v718_v10, %v518_v2  ;;  %731 = vpow2.f32 %v492_v4  ;;  %v537_v2 = vld [vmem:[%s1263_s3 + $0x98] sm:$0xff] }
 0x103   :  { %v289_v22 = vpop.f32.mrb[11].mxu0  ;;  %v369_v23 = vpop.f32.mrb[11].mxu1  ;;  %v566_v26 = vmul.f32 %v720_v17, %v534_v7  ;;  %v426_v28 = vmul.f32 0.5, %v286_v13  ;;  %v442_v29 = vmul.f32 0.5, %v366_v14 }
 0x104   :  { %v722_v24 = vpop.eup %721  ;;  %v290_v30 = vadd.f32 %v289_v22, %v913_v25  ;;  %v582_v34 = vadd.f32 %v550_v19, %v264_v11  ;;  %v370_v32 = vadd.f32 %v369_v23, %v913_v25 }
 0x105   :  { %v724_v31 = vpop.eup %723  ;;  %v551_v35 = vmul.f32 %v722_v24, %v519_v12  ;;  %v598_v36 = vadd.f32 %v566_v26, %v344_v18  ;;  %v462_v38 = vmul.f32 1.442695, %v426_v28  ;;  %v494_v39 = vmul.f32 1.442695, %v442_v29  ;;  %v522_v24 = vld [vmem:[%s1263_s3 + $0x20] sm:$0xff] }
 0x106   :  { %v567_v37 = vmul.f32 %v724_v31, %v535_v21  ;;  %614 = vst [vmem:[%s1264_s4] sm:$0xff] %v582_v34  ;;  %v427_v41 = vmul.f32 0.5, %v290_v30  ;;  %v443_v42 = vmul.f32 0.5, %v370_v32  ;;  %v538_v26 = vld [vmem:[%s1263_s3 + $0xa0] sm:$0xff] }
 0x107   :  { %v583_v40 = vadd.f32 %v551_v35, %v268_v20  ;;  %630 = vst [vmem:[%s1264_s4 + $0x80] sm:$0xff] %v598_v36  ;;  %733 = vpow2.f32 %v462_v38  ;;  %v976_v45 = vpop.f32.mrb[12].mxu0  ;;  %v978_v48 = vpop.f32.mrb[12].mxu1 }
 0x108   :  { %v599_v43 = vadd.f32 %v567_v37, %v348_v27  ;;  %735 = vpow2.f32 %v494_v39  ;;  %v464_v49 = vmul.f32 1.442695, %v427_v41  ;;  %v496_v50 = vmul.f32 1.442695, %v443_v42  ;;  %v295_v51 = vpop.f32.mrb[13].mxu0  ;;  %v375_v52 = vpop.f32.mrb[13].mxu1 }
 0x109   :  { %615 = vst [vmem:[%s1264_s4 + $0x8] sm:$0xff] %v583_v40  ;;  %v726_v55 = vpop.eup %725  ;;  %v296_v59 = vadd.f32 %v295_v51, %v913_v25  ;;  %v376_v60 = vadd.f32 %v375_v52, %v913_v25  ;;  %v995_v62 = vpop.f32.mrb[14].mxu0  ;;  %v284_v40 = vadd.f32 %v938_v5, %v933_v61  ;;  %v364_v41 = vadd.f32 %v940_v6, %v933_v61 }
 0x10a   :  { %631 = vst [vmem:[%s1264_s4 + $0x88] sm:$0xff] %v599_v43  ;;  %v997_v63 = vpop.f32.mrb[14].mxu1  ;;  %v728_v0 = vpop.eup %727  ;;  %v552_v1 = vmul.f32 %v726_v55, %v520_v33  ;;  %737 = vpow2.f32 %v464_v49  ;;  %v523_v43 = vld [vmem:[%s1263_s3 + $0x28] sm:$0xff]  ;;  %v288_v6 = vadd.f32 %v951_v15, %v933_v61 }
 0x10b   :  { %v299_v3 = vpop.f32.mrb[15].mxu0  ;;  %v379_v4 = vpop.f32.mrb[15].mxu1  ;;  %v568_v8 = vmul.f32 %v728_v0, %v536_v44  ;;  %739 = vpow2.f32 %v496_v50  ;;  %v428_v9 = vmul.f32 0.5, %v296_v59  ;;  %v444_v10 = vmul.f32 0.5, %v376_v60  ;;  %v539_v50 = vld [vmem:[%s1263_s3 + $0xa8] sm:$0xff] }
 0x10c   :  { %v730_v7 = vpop.eup %729  ;;  %v584_v12 = vadd.f32 %v552_v1, %v274_v56  ;;  %v300_v53 = vadd.f32 %v299_v3, %v913_v25  ;;  %v380_v14 = vadd.f32 %v379_v4, %v913_v25  ;;  %v524_v4 = vld [vmem:[%s1263_s3 + $0x30] sm:$0xff] }
 0x10d   :  { %v732_v11 = vpop.eup %731  ;;  %v553_v13 = vmul.f32 %v730_v7, %v521_v58  ;;  %v600_v54 = vadd.f32 %v568_v8, %v354_v57  ;;  %v466_v18 = vmul.f32 1.442695, %v428_v9  ;;  %v498_v19 = vmul.f32 1.442695, %v444_v10  ;;  %v540_v7 = vld [vmem:[%s1263_s3 + $0xb0] sm:$0xff] }
 0x10e   :  { %v569_v17 = vmul.f32 %v732_v11, %v537_v2  ;;  %616 = vst [vmem:[%s1264_s4 + $0x10] sm:$0xff] %v584_v12  ;;  %v429_v21 = vmul.f32 0.5, %v300_v53  ;;  %v445_v22 = vmul.f32 0.5, %v380_v14 }
 0x10f   :  { %v585_v20 = vadd.f32 %v553_v13, %v278_v46  ;;  %632 = vst [vmem:[%s1264_s4 + $0x90] sm:$0xff] %v600_v54  ;;  %741 = vpow2.f32 %v466_v18  ;;  %v1020_v28 = vpop.f32.mrb[16].mxu0  ;;  %v1022_v29 = vpop.f32.mrb[16].mxu1  ;;  %v368_v46 = vadd.f32 %v953_v16, %v933_v61 }
 0x110   :  { %v601_v23 = vadd.f32 %v569_v17, %v358_v47  ;;  %743 = vpow2.f32 %v498_v19  ;;  %v468_v30 = vmul.f32 1.442695, %v429_v21  ;;  %v500_v31 = vmul.f32 1.442695, %v445_v22  ;;  %v305_v34 = vpop.f32.mrb[17].mxu0  ;;  %v385_v27 = vpop.f32.mrb[17].mxu1 }
 0x111   :  { %617 = vst [vmem:[%s1264_s4 + $0x18] sm:$0xff] %v585_v20  ;;  %v734_v35 = vpop.eup %733  ;;  %v306_v32 = vadd.f32 %v305_v34, %v913_v25  ;;  %v386_v36 = vadd.f32 %v385_v27, %v913_v25  ;;  %v1032_v37 = vpop.f32.mrb[18].mxu0  ;;  %v294_v20 = vadd.f32 %v976_v45, %v933_v61  ;;  %v374_v21 = vadd.f32 %v978_v48, %v933_v61 }
 0x112   :  { %633 = vst [vmem:[%s1264_s4 + $0x98] sm:$0xff] %v601_v23  ;;  %v1034_v38 = vpop.f32.mrb[18].mxu1  ;;  %v736_v39 = vpop.eup %735  ;;  %v554_v42 = vmul.f32 %v734_v35, %v522_v24  ;;  %745 = vpow2.f32 %v468_v30  ;;  %v525_v23 = vld [vmem:[%s1263_s3 + $0x38] sm:$0xff]  ;;  %v298_v48 = vadd.f32 %v995_v62, %v933_v61 }
 0x113   :  { %v309_v33 = vpop.f32.mrb[19].mxu0  ;;  %v389_v44 = vpop.f32.mrb[19].mxu1  ;;  %v570_v49 = vmul.f32 %v736_v39, %v538_v26  ;;  %747 = vpow2.f32 %v500_v31  ;;  %v430_v51 = vmul.f32 0.5, %v306_v32  ;;  %v446_v52 = vmul.f32 0.5, %v386_v36  ;;  %v541_v31 = vld [vmem:[%s1263_s3 + $0xb8] sm:$0xff] }
 0x114   :  { %v738_v5 = vpop.eup %737  ;;  %v586_v55 = vadd.f32 %v554_v42, %v284_v40  ;;  %v310_v56 = vadd.f32 %v309_v33, %v913_v25  ;;  %v390_v57 = vadd.f32 %v389_v44, %v913_v25  ;;  %v378_v33 = vadd.f32 %v997_v63, %v933_v61 }
 0x115   :  { %v740_v58 = vpop.eup %739  ;;  %v602_v59 = vadd.f32 %v570_v49, %v364_v41  ;;  %v555_v60 = vmul.f32 %v738_v5, %v523_v43  ;;  %v470_v0 = vmul.f32 1.442695, %v430_v51  ;;  %v502_v1 = vmul.f32 1.442695, %v446_v52  ;;  %v526_v51 = vld [vmem:[%s1263_s3 + $0x40] sm:$0xff] }
 0x116   :  { %618 = vst [vmem:[%s1264_s4 + $0x20] sm:$0xff] %v586_v55  ;;  %v571_v47 = vmul.f32 %v740_v58, %v539_v50  ;;  %v431_v2 = vmul.f32 0.5, %v310_v56  ;;  %v447_v3 = vmul.f32 0.5, %v390_v57  ;;  %v542_v52 = vld [vmem:[%s1263_s3 + $0xc0] sm:$0xff] }
 0x117   :  { %634 = vst [vmem:[%s1264_s4 + $0xa0] sm:$0xff] %v602_v59  ;;  %v587_v15 = vadd.f32 %v555_v60, %v288_v6  ;;  %749 = vpow2.f32 %v470_v0  ;;  %v1064_v8 = vpop.f32.mrb[20].mxu0  ;;  %v1066_v16 = vpop.f32.mrb[20].mxu1 }
 0x118   :  { %v603_v9 = vadd.f32 %v571_v47, %v368_v46  ;;  %751 = vpow2.f32 %v502_v1  ;;  %v472_v10 = vmul.f32 1.442695, %v431_v2  ;;  %v504_v11 = vmul.f32 1.442695, %v447_v3  ;;  %v315_v12 = vpop.f32.mrb[21].mxu0  ;;  %v395_v13 = vpop.f32.mrb[21].mxu1 }
 0x119   :  { %v742_v53 = vpop.eup %741  ;;  %619 = vst [vmem:[%s1264_s4 + $0x28] sm:$0xff] %v587_v15  ;;  %v316_v14 = vadd.f32 %v315_v12, %v913_v25  ;;  %v396_v54 = vadd.f32 %v395_v13, %v913_v25  ;;  %v1073_v17 = vpop.f32.mrb[22].mxu0  ;;  %v304_v2 = vadd.f32 %v1020_v28, %v933_v61  ;;  %v384_v3 = vadd.f32 %v1022_v29, %v933_v61 }
 0x11a   :  { %v1075_v18 = vpop.f32.mrb[22].mxu1  ;;  %v744_v19 = vpop.eup %743  ;;  %635 = vst [vmem:[%s1264_s4 + $0xa8] sm:$0xff] %v603_v9  ;;  %v556_v22 = vmul.f32 %v742_v53, %v524_v4  ;;  %753 = vpow2.f32 %v472_v10  ;;  %v527_v4 = vld [vmem:[%s1263_s3 + $0x48] sm:$0xff]  ;;  %v308_v29 = vadd.f32 %v1032_v37, %v933_v61 }
 0x11b   :  { %v319_v24 = vpop.f32.mrb[23].mxu0  ;;  %v399_v26 = vpop.f32.mrb[23].mxu1  ;;  %v572_v30 = vmul.f32 %v744_v19, %v540_v7  ;;  %755 = vpow2.f32 %v504_v11  ;;  %v432_v34 = vmul.f32 0.5, %v316_v14  ;;  %v448_v27 = vmul.f32 0.5, %v396_v54  ;;  %v543_v11 = vld [vmem:[%s1263_s3 + $0xc8] sm:$0xff] }
 0x11c   :  { %v746_v45 = vpop.eup %745  ;;  %v588_v35 = vadd.f32 %v556_v22, %v294_v20  ;;  %v320_v32 = vadd.f32 %v319_v24, %v913_v25  ;;  %v400_v36 = vadd.f32 %v399_v26, %v913_v25  ;;  %v388_v24 = vadd.f32 %v1034_v38, %v933_v61 }
 0x11d   :  { %v748_v39 = vpop.eup %747  ;;  %v604_v40 = vadd.f32 %v572_v30, %v374_v21  ;;  %v557_v41 = vmul.f32 %v746_v45, %v525_v23  ;;  %v474_v42 = vmul.f32 1.442695, %v432_v34  ;;  %v506_v43 = vmul.f32 1.442695, %v448_v27  ;;  %v528_v34 = vld [vmem:[%s1263_s3 + $0x50] sm:$0xff] }
 0x11e   :  { %620 = vst [vmem:[%s1264_s4 + $0x30] sm:$0xff] %v588_v35  ;;  %v573_v44 = vmul.f32 %v748_v39, %v541_v31  ;;  %v433_v49 = vmul.f32 0.5, %v320_v32  ;;  %v449_v50 = vmul.f32 0.5, %v400_v36  ;;  %v544_v27 = vld [vmem:[%s1263_s3 + $0xd0] sm:$0xff] }
 0x11f   :  { %636 = vst [vmem:[%s1264_s4 + $0xb0] sm:$0xff] %v604_v40  ;;  %v589_v62 = vadd.f32 %v557_v41, %v298_v48  ;;  %757 = vpow2.f32 %v474_v42  ;;  %v1108_v5 = vpop.f32.mrb[24].mxu0  ;;  %v1110_v63 = vpop.f32.mrb[24].mxu1 }
 0x120   :  { %v605_v55 = vadd.f32 %v573_v44, %v378_v33  ;;  %759 = vpow2.f32 %v506_v43  ;;  %v476_v6 = vmul.f32 1.442695, %v433_v49  ;;  %v508_v56 = vmul.f32 1.442695, %v449_v50  ;;  %v325_v57 = vpop.f32.mrb[25].mxu0  ;;  %v405_v58 = vpop.f32.mrb[25].mxu1 }
 0x121   :  { %v750_v59 = vpop.eup %749  ;;  %621 = vst [vmem:[%s1264_s4 + $0x38] sm:$0xff] %v589_v62  ;;  %v326_v60 = vadd.f32 %v325_v57, %v913_v25  ;;  %v406_v0 = vadd.f32 %v405_v58, %v913_v25  ;;  %v1117_v1 = vpop.f32.mrb[26].mxu0  ;;  %v314_v49 = vadd.f32 %v1064_v8, %v933_v61  ;;  %v394_v50 = vadd.f32 %v1066_v16, %v933_v61 }
 0x122   :  { %v1119_v46 = vpop.f32.mrb[26].mxu1  ;;  %v752_v47 = vpop.eup %751  ;;  %637 = vst [vmem:[%s1264_s4 + $0xb8] sm:$0xff] %v605_v55  ;;  %v558_v15 = vmul.f32 %v750_v59, %v526_v51  ;;  %761 = vpow2.f32 %v476_v6  ;;  %v529_v51 = vld [vmem:[%s1263_s3 + $0x58] sm:$0xff]  ;;  %v318_v16 = vadd.f32 %v1073_v17, %v933_v61  ;;  %v530_v17 = vld [vmem:[%s1263_s3 + $0x60] sm:$0xff] }
 0x123   :  { %v329_v7 = vpop.f32.mrb[27].mxu0  ;;  %v409_v9 = vpop.f32.mrb[27].mxu1  ;;  %v574_v10 = vmul.f32 %v752_v47, %v542_v52  ;;  %763 = vpow2.f32 %v508_v56  ;;  %v434_v12 = vmul.f32 0.5, %v326_v60  ;;  %v450_v13 = vmul.f32 0.5, %v406_v0  ;;  %v545_v56 = vld [vmem:[%s1263_s3 + $0xd8] sm:$0xff] }
 0x124   :  { %v754_v28 = vpop.eup %753  ;;  %v590_v53 = vadd.f32 %v558_v15, %v304_v2  ;;  %v330_v14 = vadd.f32 %v329_v7, %v913_v25  ;;  %v410_v54 = vadd.f32 %v409_v9, %v913_v25  ;;  %v398_v7 = vadd.f32 %v1075_v18, %v933_v61 }
 0x125   :  { %v756_v19 = vpop.eup %755  ;;  %v606_v20 = vadd.f32 %v574_v10, %v384_v3  ;;  %v559_v21 = vmul.f32 %v754_v28, %v527_v4  ;;  %v478_v22 = vmul.f32 1.442695, %v434_v12  ;;  %v510_v23 = vmul.f32 1.442695, %v450_v13  ;;  %v546_v13 = vld [vmem:[%s1263_s3 + $0xe0] sm:$0xff] }
 0x126   :  { %622 = vst [vmem:[%s1264_s4 + $0x40] sm:$0xff] %v590_v53  ;;  %v575_v26 = vmul.f32 %v756_v19, %v543_v11  ;;  %v435_v30 = vmul.f32 0.5, %v330_v14  ;;  %v451_v31 = vmul.f32 0.5, %v410_v54  ;;  %v324_v14 = vadd.f32 %v1108_v5, %v933_v61  ;;  %v531_v19 = vld [vmem:[%s1263_s3 + $0x68] sm:$0xff] }
 0x127   :  { %638 = vst [vmem:[%s1264_s4 + $0xc0] sm:$0xff] %v606_v20  ;;  %v591_v37 = vadd.f32 %v559_v21, %v308_v29  ;;  %765 = vpow2.f32 %v478_v22  ;;  %v1152_v45 = vpop.f32.mrb[28].mxu0  ;;  %v1154_v38 = vpop.f32.mrb[28].mxu1  ;;  %v404_v20 = vadd.f32 %v1110_v63, %v933_v61  ;;  %v547_v22 = vld [vmem:[%s1263_s3 + $0xe8] sm:$0xff]  ;;  %v328_v5 = vadd.f32 %v1117_v1, %v933_v61  ;;  %v548_v1 = vld [vmem:[%s1263_s3 + $0xf0] sm:$0xff] }
 0x128   :  { %v607_v35 = vadd.f32 %v575_v26, %v388_v24  ;;  %767 = vpow2.f32 %v510_v23  ;;  %v480_v48 = vmul.f32 1.442695, %v435_v30  ;;  %v512_v32 = vmul.f32 1.442695, %v451_v31  ;;  %v335_v36 = vpop.f32.mrb[29].mxu0  ;;  %v415_v39 = vpop.f32.mrb[29].mxu1 }
 0x129   :  { %v758_v40 = vpop.eup %757  ;;  %623 = vst [vmem:[%s1264_s4 + $0x48] sm:$0xff] %v591_v37  ;;  %v336_v41 = vadd.f32 %v335_v36, %v913_v25  ;;  %v416_v42 = vadd.f32 %v415_v39, %v913_v25  ;;  %v1161_v43 = vpop.f32.mrb[30].mxu0  ;;  %v408_v63 = vadd.f32 %v1119_v46, %v933_v61  ;;  %v533_v39 = vld [vmem:[%s1263_s3 + $0x78] sm:$0xff] }
 0x12a   :  { %v1163_v33 = vpop.f32.mrb[30].mxu1  ;;  %v760_v44 = vpop.eup %759  ;;  %639 = vst [vmem:[%s1264_s4 + $0xc8] sm:$0xff] %v607_v35  ;;  %v560_v62 = vmul.f32 %v758_v40, %v528_v34  ;;  %769 = vpow2.f32 %v480_v48  ;;  %v414_v40 = vadd.f32 %v1154_v38, %v933_v61 }
 0x12b   :  { %v339_v52 = vpop.f32.mrb[31].mxu0  ;;  %v419_v55 = vpop.f32.mrb[31].mxu1  ;;  %v576_v6 = vmul.f32 %v760_v44, %v544_v27  ;;  %771 = vpow2.f32 %v512_v32  ;;  %v436_v57 = vmul.f32 0.5, %v336_v41  ;;  %v452_v58 = vmul.f32 0.5, %v416_v42  ;;  %v532_v27 = vld [vmem:[%s1263_s3 + $0x70] sm:$0xff]  ;;  %v549_v42 = vld [vmem:[%s1263_s3 + $0xf8] sm:$0xff] }
 0x12c   :  { %v762_v8 = vpop.eup %761  ;;  %v592_v59 = vadd.f32 %v560_v62, %v314_v49  ;;  %v340_v60 = vadd.f32 %v339_v52, %v913_v25  ;;  %v420_v0 = vadd.f32 %v419_v55, %v913_v25  ;;  %v334_v32 = vadd.f32 %v1152_v45, %v933_v61 }
 0x12d   :  { %v764_v47 = vpop.eup %763  ;;  %v608_v2 = vadd.f32 %v576_v6, %v394_v50  ;;  %v561_v3 = vmul.f32 %v762_v8, %v529_v51  ;;  %v482_v15 = vmul.f32 1.442695, %v436_v57  ;;  %v514_v4 = vmul.f32 1.442695, %v452_v58 }
 0x12e   :  { %624 = vst [vmem:[%s1264_s4 + $0x50] sm:$0xff] %v592_v59  ;;  %v577_v9 = vmul.f32 %v764_v47, %v545_v56  ;;  %v437_v10 = vmul.f32 0.5, %v340_v60  ;;  %v453_v11 = vmul.f32 0.5, %v420_v0  ;;  %v338_v45 = vadd.f32 %v1161_v43, %v933_v61 }
 0x12f   :  { %640 = vst [vmem:[%s1264_s4 + $0xd0] sm:$0xff] %v608_v2  ;;  %v593_v25 = vadd.f32 %v561_v3, %v318_v16  ;;  %773 = vpow2.f32 %v482_v15  ;;  %v418_v38 = vadd.f32 %v1163_v33, %v933_v61 }
 0x130   :  { %v609_v12 = vadd.f32 %v577_v9, %v398_v7  ;;  %775 = vpow2.f32 %v514_v4  ;;  %v484_v18 = vmul.f32 1.442695, %v437_v10  ;;  %v516_v28 = vmul.f32 1.442695, %v453_v11 }
 0x131   :  { %v766_v53 = vpop.eup %765  ;;  %625 = vst [vmem:[%s1264_s4 + $0x58] sm:$0xff] %v593_v25 }
 0x132   :  { %v768_v29 = vpop.eup %767  ;;  %641 = vst [vmem:[%s1264_s4 + $0xd8] sm:$0xff] %v609_v12  ;;  %v562_v54 = vmul.f32 %v766_v53, %v530_v17  ;;  %777 = vpow2.f32 %v484_v18 }
 0x133   :  { %v578_v21 = vmul.f32 %v768_v29, %v546_v13  ;;  %779 = vpow2.f32 %v516_v28 }
 0x134   :  { %v770_v23 = vpop.eup %769  ;;  %v594_v24 = vadd.f32 %v562_v54, %v324_v14 }
 0x135   :  { %v772_v26 = vpop.eup %771  ;;  %v610_v30 = vadd.f32 %v578_v21, %v404_v20  ;;  %v563_v31 = vmul.f32 %v770_v23, %v531_v19 }
 0x136   :  { %626 = vst [vmem:[%s1264_s4 + $0x60] sm:$0xff] %v594_v24  ;;  %v579_v37 = vmul.f32 %v772_v26, %v547_v22 }
 0x137   :  { %642 = vst [vmem:[%s1264_s4 + $0xe0] sm:$0xff] %v610_v30  ;;  %v595_v34 = vadd.f32 %v563_v31, %v328_v5 }
 0x138   :  { %v611_v35 = vadd.f32 %v579_v37, %v408_v63 }
 0x139   :  { %v774_v48 = vpop.eup %773  ;;  %627 = vst [vmem:[%s1264_s4 + $0x68] sm:$0xff] %v595_v34 }
 0x13a   :  { %v776_v46 = vpop.eup %775  ;;  %643 = vst [vmem:[%s1264_s4 + $0xe8] sm:$0xff] %v611_v35  ;;  %v564_v36 = vmul.f32 %v774_v48, %v532_v27 }
 0x13b   :  { %v580_v41 = vmul.f32 %v776_v46, %v548_v1 }
 0x13c   :  { %v778_v44 = vpop.eup %777  ;;  %v596_v49 = vadd.f32 %v564_v36, %v334_v32 }
 0x13d   :  { %v780_v50 = vpop.eup %779  ;;  %v612_v62 = vadd.f32 %v580_v41, %v414_v40  ;;  %v565_v51 = vmul.f32 %v778_v44, %v533_v39 }
 0x13e   :  { %628 = vst [vmem:[%s1264_s4 + $0x70] sm:$0xff] %v596_v49  ;;  %v581_v52 = vmul.f32 %v780_v50, %v549_v42 }
 0x13f   :  { %644 = vst [vmem:[%s1264_s4 + $0xf0] sm:$0xff] %v612_v62  ;;  %v597_v55 = vadd.f32 %v565_v51, %v338_v45 }
 0x140   :  { %v613_v6 = vadd.f32 %v581_v52, %v418_v38 }
 0x141   :  { %629 = vst [vmem:[%s1264_s4 + $0x78] sm:$0xff] %v597_v55 }
 0x142   :  { %645 = vst [vmem:[%s1264_s4 + $0xf8] sm:$0xff] %v613_v6 }
 0x143   :  { %650 = vsyncpa [#allocation3], 1 }

</bundles_post_ra>
